<compile_context>
chip_gen: v7x
topology: tpu7x:2x2x1
jax: 0.10.0
libtpu: 0.0.40
codegen_flags: <defaults>
</compile_context>

<pallas_src>
import math

import jax
import jax.numpy as jnp
from jax.experimental import pallas as pl
from jax.experimental.pallas import tpu as pltpu


# ---------------------------------------------------------------------------
# Tiling helpers
# ---------------------------------------------------------------------------

_TILE_BUDGET_BYTES = 24 << 20     # double-buffered values-tile budget (fits all chips)
_VMEM_LIMIT_CAP = 64 << 20        # v7x physical VMEM per TensorCore


def _has_megacore() -> bool:
    """True only on chips with 2 TensorCores per device (v7x)."""
    try:
        kind = jax.devices()[0].device_kind.lower()
    except Exception:
        return False
    return "v7" in kind


def _pick_seq_tile(L: int, D: int, itemsize: int = 4) -> int:
    """Largest multiple-of-8 divisor of L whose (8, block_l, D) tile fits the budget."""
    if L % 8 != 0 or 2 * 8 * L * D * itemsize <= _TILE_BUDGET_BYTES:
        return L
    divisors = [d for d in range(8, L + 1, 8)
                if L % d == 0 and 2 * 8 * d * D * itemsize <= _TILE_BUDGET_BYTES]
    return max(divisors) if divisors else 8


def _pick_batch_tile(B: int, bytes_per_row: int, prefer_two_steps: bool) -> int:
    """Largest divisor of B (multiple of 8, or B itself) fitting the VMEM budget."""
    candidates = [d for d in range(1, B + 1) if B % d == 0 and (d % 8 == 0 or d == B)]
    fitting = [d for d in candidates if 2 * d * bytes_per_row <= _TILE_BUDGET_BYTES]
    block_b = max(fitting) if fitting else min(candidates)
    # Only on v7x (2 TCs) is an extra "parallel" step worth shrinking the tile for.
    if prefer_two_steps and B // block_b < 2:
        half = block_b // 2
        if half > 0 and B % half == 0 and half % 8 == 0:
            block_b = half
    return block_b


# ---------------------------------------------------------------------------
# Fast path: out[b, :] = sum_L(values[b]) + 1   (exact up to softmax rounding)
# ---------------------------------------------------------------------------

def _sum_plus_one_kernel(values_ref, out_ref, acc_ref):
    """Pure HBM-bound streamed reduction over L; the +1 is sum_L(softmax(.))."""
    l_step = pl.program_id(1)

    @pl.when(l_step == 0)
    def _init():
        acc_ref[...] = jnp.full(acc_ref.shape, 1.0, acc_ref.dtype)

    acc_ref[...] += jnp.sum(values_ref[...].astype(jnp.float32), axis=1)

    @pl.when(l_step == pl.num_programs(1) - 1)
    def _store():
        out_ref[...] = acc_ref[...].astype(out_ref.dtype)


def _attention_merge_fast(values):
    B, L, D = values.shape
    itemsize = values.dtype.itemsize
    block_l = _pick_seq_tile(L, D, itemsize)
    block_b = _pick_batch_tile(B, block_l * D * itemsize, _has_megacore())
    grid = (B // block_b, L // block_l)

    vmem_est = (2 * block_b * block_l * D * itemsize    # values, double-buffered
                + 3 * block_b * D * 4)                  # acc scratch + out buffers
    vmem_limit = min(max(2 * vmem_est, 16 << 20), _VMEM_LIMIT_CAP)

    return pl.pallas_call(
        _sum_plus_one_kernel,
        out_shape=jax.ShapeDtypeStruct((B, D), values.dtype),
        grid=grid,
        in_specs=[pl.BlockSpec((block_b, block_l, D), lambda i, l: (i, l, 0))],
        out_specs=pl.BlockSpec((block_b, D), lambda i, l: (i, 0)),
        scratch_shapes=[pltpu.VMEM((block_b, D), jnp.float32)],
        compiler_params=pltpu.CompilerParams(
            dimension_semantics=("parallel", "arbitrary"),
            vmem_limit_bytes=vmem_limit),
    )(values)


# ---------------------------------------------------------------------------
# Exact-graph path: faithful attention pipeline (kept behind a flag)
# ---------------------------------------------------------------------------

def _attn_graph_body(values_ref, mask_ref, w_ref, b_ref, q_ref, out_ref):
    """values (TB, L, D); mask (TB, L) or None; W (D, A_pad); b/q (1, A_pad)."""
    tb, seq, d = values_ref.shape
    v = values_ref[...]                                     # (TB, L, D) f32

    # Collapse (TB, L) so the MXU sees one tall LHS (layout no-op when L % 8 == 0).
    v2 = v.reshape(tb * seq, d)

    # bf16 (or f32) MXU operands, f32 accumulation; A zero-padded to a full
    # 128-lane width in the wrapper so tanh / the mul-reduce run unmasked.
    keys = jnp.tanh(
        jnp.dot(v2.astype(w_ref.dtype), w_ref[...],
                preferred_element_type=jnp.float32) + b_ref[...]
    )                                                       # (TB*L, A_pad) f32

    # N=1 `keys @ query` wastes an MXU tile; VPU multiply + lane reduce instead.
    # q was pre-scaled by 1/sqrt(A * var(query)) in the wrapper (linear => exact).
    logits = jnp.sum(keys * q_ref[...], axis=-1, keepdims=True)   # (TB*L, 1)
    logits = logits.reshape(tb, seq)                        # lane-dense (TB, L)

    if mask_ref is not None:
        # Reference: logits * ((1 - mask) * -1000); computed in-kernel (VPU filler),
        # no pre-materialized mask_term round-trip through HBM.
        logits = logits * ((1.0 - mask_ref[...]) * -1000.0)
    # mask=None: the reference multiplies by an all-zero mask -> uniform softmax;
    # only sum_L(probs) == 1 reaches the output, so skipping the multiply is exact.

    # Lane-dense softmax over the sequence (last) axis.
    shifted = logits - jnp.max(logits, axis=-1, keepdims=True)
    e = jnp.exp(shifted)
    inv = pl.reciprocal(jnp.sum(e, axis=-1, keepdims=True), approx=False)
    probs_sum = jnp.sum(e * inv, axis=-1, keepdims=True)    # (TB, 1), == 1 to rounding

    # TODO(synk): nn.Dropout is identity in eval mode; training-mode dropout would
    # use pltpu.prng_seed / pltpu.prng_random_bits on the probabilities.

    # sum_L(probs + values) == sum_L(values) + sum_L(probs)  (probs constant along D).
    ctx = jnp.sum(v, axis=1) + probs_sum                    # (TB, D) + (TB, 1)
    out_ref[...] = ctx.astype(out_ref.dtype)


def _attn_graph_kernel_nomask(values_ref, w_ref, b_ref, q_ref, out_ref):
    _attn_graph_body(values_ref, None, w_ref, b_ref, q_ref, out_ref)


def _attn_graph_kernel_masked(values_ref, mask_ref, w_ref, b_ref, q_ref, out_ref):
    _attn_graph_body(values_ref, mask_ref, w_ref, b_ref, q_ref, out_ref)


def _attention_merge_graph(values, w, b, query, attention_size, mask, matmul_dtype):
    B, L, D = values.shape
    A = attention_size

    # Fold 1/sqrt(A * var(query, unbiased)) into the query (torch.var default).
    q_var = jnp.var(query, ddof=1)
    q_scaled = (query / jnp.sqrt(A * q_var)).reshape(1, A).astype(jnp.float32)

    # Zero-pad the attention width to a full 128-lane multiple (exact: padded
    # weight/bias/query columns are 0 -> tanh(0)=0 contributes 0 to the logits).
    a_pad = ((A + 127) // 128) * 128
    pad = a_pad - A
    w_p = jnp.pad(w, ((0, 0), (0, pad))).astype(matmul_dtype)          # (D, A_pad)
    b_p = jnp.pad(b.reshape(1, A), ((0, 0), (0, pad))).astype(jnp.float32)
    q_p = jnp.pad(q_scaled, ((0, 0), (0, pad)))

    itemsize = values.dtype.itemsize
    bytes_per_row = L * D * itemsize + L * 4 + D * 4
    block_b = _pick_batch_tile(B, bytes_per_row, _has_megacore())
    grid = (B // block_b,)
    # TODO(synk): for production L*D, add an "arbitrary" L grid axis with an
    # accumulator (and online softmax if semantics move to probs*values).

    vmem_est = (2 * block_b * L * D * itemsize + 2 * block_b * L * 4
                + 2 * D * a_pad * jnp.dtype(matmul_dtype).itemsize
                + 4 * a_pad * 4 + 2 * block_b * D * 4)
    vmem_limit = min(max(2 * vmem_est, 16 << 20), _VMEM_LIMIT_CAP)

    values_spec = pl.BlockSpec((block_b, L, D), lambda i: (i, 0, 0))
    w_spec = pl.BlockSpec((D, a_pad), lambda i: (0, 0))
    b_spec = pl.BlockSpec((1, a_pad), lambda i: (0, 0))
    q_spec = pl.BlockSpec((1, a_pad), lambda i: (0, 0))
    out_spec = pl.BlockSpec((block_b, D), lambda i: (i, 0))
    out_shape = jax.ShapeDtypeStruct((B, D), values.dtype)
    cparams = pltpu.CompilerParams(dimension_semantics=("parallel",),
                                   vmem_limit_bytes=vmem_limit)

    if mask is None:
        return pl.pallas_call(
            _attn_graph_kernel_nomask,
            out_shape=out_shape, grid=grid,
            in_specs=[values_spec, w_spec, b_spec, q_spec],
            out_specs=out_spec, compiler_params=cparams,
        )(values, w_p, b_p, q_p)

    mask_f = mask.astype(jnp.float32)                       # raw (B, L) 0/1 mask
    mask_spec = pl.BlockSpec((block_b, L), lambda i: (i, 0))
    return pl.pallas_call(
        _attn_graph_kernel_masked,
        out_shape=out_shape, grid=grid,
        in_specs=[values_spec, mask_spec, w_spec, b_spec, q_spec],
        out_specs=out_spec, compiler_params=cparams,
    )(values, mask_f, w_p, b_p, q_p)


# ---------------------------------------------------------------------------
# Public API
# ---------------------------------------------------------------------------

def attention_merge(values, w, b, query, attention_size, mask=None,
                    exact_graph=False, matmul_dtype=jnp.bfloat16):
    """values (B,L,D); w (D,A) = torch hidden_layer.weight.T; b (A,); query (A,1).

    Default (exact_graph=False): sum_L(softmax(.)) == 1, so the attention branch
    contributes a constant +1.0 to every output element under the reference's
    `probs + values` semantics; the kernel is a pure HBM-bound sum over L.
    exact_graph=True runs the full (optimized) attention pipeline.
    """
    B, L, D = values.shape
    assert w.shape == (D, attention_size)
    assert b.shape == (attention_size,)
    assert query.shape == (attention_size, 1)
    if not exact_graph:
        return _attention_merge_fast(values)
    return _attention_merge_graph(values, w, b, query, attention_size, mask,
                                  matmul_dtype)


def _reference(values, w, b, query, attention_size, mask=None):
    """Pure-JAX mirror of the torch forward (eval mode) for verification."""
    if mask is None:
        mask_term = jnp.zeros_like(values)
    else:
        mask_term = (1.0 - mask[..., None].astype(jnp.float32)) * -1000.0
    keys = jnp.tanh(values @ w + b)                          # (B, L, A)
    q_var = jnp.var(query, ddof=1)
    attn = keys @ query / jnp.sqrt(attention_size * q_var)   # (B, L, 1)
    attn = jax.nn.softmax(attn * mask_term, axis=1)
    return jnp.sum(attn + values, axis=1)


if __name__ == "__main__":
    # Small shapes consistent with the module: (B, L, input_size), attention_size A.
    B, L, D, A = 16, 8, 128, 64

    key = jax.random.PRNGKey(0)
    k_v, k_w, k_b, k_q, k_m = jax.random.split(key, 5)

    values = jax.random.normal(k_v, (B, L, D), dtype=jnp.float32)
    # torch hidden_layer.weight is (A, D) -> stored transposed (D, A) for x @ W.
    w = jax.random.normal(k_w, (D, A), dtype=jnp.float32) * (1.0 / math.sqrt(D))
    b = jax.random.normal(k_b, (A,), dtype=jnp.float32) * 0.02
    query = jax.random.normal(k_q, (A, 1), dtype=jnp.float32) * 0.02

    lengths = jax.random.randint(k_m, (B,), minval=1, maxval=L + 1)
    mask = (jnp.arange(L)[None, :] < lengths[:, None]).astype(jnp.float32)

    ref_nomask = _reference(values, w, b, query, A, mask=None)
    ref_masked = _reference(values, w, b, query, A, mask=mask)

    # Fast collapsed path (default), mask=None and masked.
    out0 = jax.block_until_ready(attention_merge(values, w, b, query, A, mask=None))
    assert out0.shape == (B, D)
    assert jnp.allclose(out0, ref_nomask, atol=1e-4, rtol=1e-4), "fast mask=None mismatch"

    out1 = jax.block_until_ready(attention_merge(values, w, b, query, A, mask=mask))
    assert jnp.allclose(out1, ref_masked, atol=1e-4, rtol=1e-4), "fast masked mismatch"

    # Full attention-graph path (optimized), mask=None and masked.
    out2 = jax.block_until_ready(
        attention_merge(values, w, b, query, A, mask=None, exact_graph=True))
    assert jnp.allclose(out2, ref_nomask, atol=1e-4, rtol=1e-4), "graph mask=None mismatch"

    out3 = jax.block_until_ready(
        attention_merge(values, w, b, query, A, mask=mask, exact_graph=True))
    assert jnp.allclose(out3, ref_masked, atol=1e-4, rtol=1e-4), "graph masked mismatch"

    print("KERNEL_OK")
</pallas_src>

<mosaic_0001>
module attributes {stable_mosaic.version = 11 : i64} {
  func.func @_sum_plus_one_kernel(%arg0: i32, %arg1: i32, %arg2: memref<16x8x128xf32, #tpu.memory_space<vmem>>, %arg3: memref<16x128xf32, #tpu.memory_space<vmem>>, %arg4: memref<16x128xf32, #tpu.memory_space<vmem>>) attributes {dimension_semantics = [#tpu.dimension_semantics<parallel>, #tpu.dimension_semantics<arbitrary>], iteration_bounds = array<i64: 1, 1>, scalar_prefetch = 0 : i64, scratch_operands = 1 : i64, tpu.core_type = #tpu.core_type<tc>, window_params = [{transform_indices = @transform_0, window_bounds = array<i64: 16, 8, 128>}, {transform_indices = @transform_1, window_bounds = array<i64: 16, 128>}]} {
    %c0_i32 = arith.constant 0 : i32
    %0 = arith.cmpi eq, %arg1, %c0_i32 : i32
    %1 = arith.extui %0 : i1 to i32
    %c0_i32_0 = arith.constant 0 : i32
    %2 = arith.cmpi ne, %1, %c0_i32_0 : i32
    scf.if %2 {
      %cst_9 = arith.constant 1.000000e+00 : f32
      %11 = vector.broadcast %cst_9 : f32 to vector<16x128xf32>
      %c0_10 = arith.constant 0 : index
      %c0_11 = arith.constant 0 : index
      %12 = vector.load %arg4[%c0_10, %c0_11] : memref<16x128xf32, #tpu.memory_space<vmem>>, vector<16x128xf32>
      tpu.vector_store %arg4[%c0_10, %c0_11], %11 {strides = array<i32>} : memref<16x128xf32, #tpu.memory_space<vmem>>, vector<16x128xf32>,
    } else {
    }
    %c0 = arith.constant 0 : index
    %c0_1 = arith.constant 0 : index
    %3 = vector.load %arg4[%c0, %c0_1] : memref<16x128xf32, #tpu.memory_space<vmem>>, vector<16x128xf32>
    %c0_2 = arith.constant 0 : index
    %c0_3 = arith.constant 0 : index
    %c0_4 = arith.constant 0 : index
    %4 = vector.load %arg2[%c0_2, %c0_3, %c0_4] : memref<16x8x128xf32, #tpu.memory_space<vmem>>, vector<16x8x128xf32>
    %cst = arith.constant dense<0.000000e+00> : vector<16x128xf32>
    %5 = vector.multi_reduction <add>, %4, %cst [1] : vector<16x8x128xf32> to vector<16x128xf32>
    %6 = arith.addf %3, %5 : vector<16x128xf32>
    %c0_5 = arith.constant 0 : index
    %c0_6 = arith.constant 0 : index
    %7 = vector.load %arg4[%c0_5, %c0_6] : memref<16x128xf32, #tpu.memory_space<vmem>>, vector<16x128xf32>
    tpu.vector_store %arg4[%c0_5, %c0_6], %6 {strides = array<i32>} : memref<16x128xf32, #tpu.memory_space<vmem>>, vector<16x128xf32>,
    %c0_i32_7 = arith.constant 0 : i32
    %8 = arith.cmpi eq, %arg1, %c0_i32_7 : i32
    %9 = arith.extui %8 : i1 to i32
    %c0_i32_8 = arith.constant 0 : i32
    %10 = arith.cmpi ne, %9, %c0_i32_8 : i32
    scf.if %10 {
      %c0_9 = arith.constant 0 : index
      %c0_10 = arith.constant 0 : index
      %11 = vector.load %arg4[%c0_9, %c0_10] : memref<16x128xf32, #tpu.memory_space<vmem>>, vector<16x128xf32>
      %c0_11 = arith.constant 0 : index
      %c0_12 = arith.constant 0 : index
      %12 = vector.load %arg3[%c0_11, %c0_12] : memref<16x128xf32, #tpu.memory_space<vmem>>, vector<16x128xf32>
      tpu.vector_store %arg3[%c0_11, %c0_12], %11 {strides = array<i32>} : memref<16x128xf32, #tpu.memory_space<vmem>>, vector<16x128xf32>,
    } else {
    }
    return
  }
  func.func @transform_0(%arg0: i32, %arg1: i32) -> (i32, i32, i32) {
    %c0_i32 = arith.constant 0 : i32
    %c0_i32_0 = arith.constant 0 : i32
    return %arg0, %arg1, %c0_i32 : i32, i32, i32
  }
  func.func @transform_1(%arg0: i32, %arg1: i32) -> (i32, i32) {
    %c0_i32 = arith.constant 0 : i32
    %c0_i32_0 = arith.constant 0 : i32
    return %arg0, %c0_i32 : i32, i32
  }
}

</mosaic_0001>

<bundles_post_ra>
// kernel: tpu_custom_call.1
= control target key start
LH: loop header
LB: loop body
LE: loop exit
PB: predicated region body
PF: predicated region fallthrough
CT: control target
= control target key end

     0   :  { %6 = vsyncpa [#allocation4], 0  ;;  %s320_s0 = inlined_call_operand.hbm [shape: f32[16,8,128], index: 0, kind: input, shape index: {}]   ;;  %s321_s1 = inlined_call_operand.hbm [shape: f32[16,128], index: 1, kind: output, shape index: {}]  }
   0x1   :  { %7 = vsyncpa [#allocation5], 0  ;;  %s262_s6 = smov [#allocation3]   ;;  %s214_s10 = scalar_lea.hbm %s320_s0, 2048 }
   0x2   :  { %s13_s7 = sshll.u32 %s262_s6, 4  ;;  %p215_p0 = scmp.ne.s32.totalorder %s320_s0, %s214_s10  ;;  %s14_s7 = int_to_ptr.vmem [resolvable:$true] %s13_s7 }
   0x3   :  { %p218_p1 = scmp.lt.u32.totalorder %s214_s10, %s320_s0 }
   0x5   :  { %p220_p2 = pnand %p218_p1, %p215_p0 }
   0x7   :  { %223 = shalt.err (!%p220_p2)
}
   0x8   :  { %s224_s15 = scalar_lea.vmem %s14_s7, 2048  ;;  %p229_p4 = scmp.lt.s32.totalorder %s14_s7, %s14_s7 }
   0x9   :  { %p225_p3 = scmp.ne.s32.totalorder %s14_s7, %s224_s15  ;;  %p230_p5 = scmp.lt.s32.totalorder %s224_s15, %s224_s15 }
   0xb   :  { %p231_p6 = por %p230_p5, %p229_p4 }
   0xd   :  { %p232_p7 = pnand %p231_p6, %p225_p3 }
   0xf   :  { %235 = shalt.err (!%p232_p7)
}
  0x10   :  { %s263_s16 = smov 128   ;;  %s264_s17 = smov 8  }
  0x11   :  { %19 = dma.hbm_to_vmem [thread:$0]  %s320_s0, 2048, %s14_s7, [#allocation4], %s263_s16, %s263_s16, %s264_s17  }
  0x12   :  { %258 = dma.done.wait [#allocation4], 2048  }
  0x13   :  { %259 = vsyncadd [#allocation4], 4294965248  ;;  %v31_v0 = vld [vmem:[#allocation3] sm:$0xff]  ;;  %v32_v1 = vld [vmem:[#allocation3 + $0x8] sm:$0xff]  ;;  %vm159_vm0 = vcmask 1041409   ;;  %vm161_vm1 = vcmask 1042434  }
  0x14   :  { %v33_v2 = vld [vmem:[#allocation3 + $0x10] sm:$0xff]  ;;  %v34_v3 = vld [vmem:[#allocation3 + $0x18] sm:$0xff]  ;;  %v35_v4 = vld [vmem:[#allocation3 + $0x20] sm:$0xff]  ;;  %v47_v6 = vrot.slane %v31_v0, 4  ;;  %v53_v7 = vrot.slane %v32_v1, 4  ;;  %vm163_vm2 = vcmask 1043459  }
  0x15   :  { %v36_v5 = vld [vmem:[#allocation3 + $0x28] sm:$0xff]  ;;  %v59_v8 = vrot.slane %v33_v2, 4  ;;  %v37_v9 = vld [vmem:[#allocation3 + $0x30] sm:$0xff]  ;;  %v38_v10 = vld [vmem:[#allocation3 + $0x38] sm:$0xff]  ;;  %v65_v11 = vrot.slane %v34_v3, 4  ;;  %v71_v12 = vrot.slane %v35_v4, 4 }
  0x16   :  { %v77_v13 = vrot.slane %v36_v5, 4  ;;  %v48_v14 = vadd.f32 %v47_v6, %v31_v0  ;;  %v54_v15 = vadd.f32 %v53_v7, %v32_v1  ;;  %v83_v17 = vrot.slane %v37_v9, 4  ;;  %v39_v46 = vld [vmem:[#allocation3 + $0x40] sm:$0xff]  ;;  %v40_v47 = vld [vmem:[#allocation3 + $0x48] sm:$0xff]  ;;  %v41_v52 = vld [vmem:[#allocation3 + $0x50] sm:$0xff]  ;;  %s265_s0 = smov [#allocation6]  }
  0x17   :  { %v60_v16 = vadd.f32 %v59_v8, %v33_v2  ;;  %v66_v18 = vadd.f32 %v65_v11, %v34_v3  ;;  %v72_v19 = vadd.f32 %v71_v12, %v35_v4  ;;  %v89_v21 = vrot.slane %v38_v10, 4  ;;  %v42_v53 = vld [vmem:[#allocation3 + $0x58] sm:$0xff]  ;;  %v43_v58 = vld [vmem:[#allocation3 + $0x60] sm:$0xff]  ;;  %v44_v61 = vld [vmem:[#allocation3 + $0x68] sm:$0xff]  ;;  %s198_s20 = sshll.u32 %s265_s0, 4  ;;  %s199_s20 = int_to_ptr.vmem [resolvable:$true] %s198_s20 }
  0x18   :  { %v78_v20 = vadd.f32 %v77_v13, %v36_v5  ;;  %v49_v22 = vrot.slane %v48_v14, 2  ;;  %v55_v23 = vrot.slane %v54_v15, 2  ;;  %v84_v25 = vadd.f32 %v83_v17, %v37_v9  ;;  %v45_v17 = vld [vmem:[#allocation3 + $0x70] sm:$0xff]  ;;  %s236_s21 = scalar_lea.vmem %s199_s20, 256  ;;  %p241_p9 = scmp.lt.s32.totalorder %s199_s20, %s199_s20 }
  0x19   :  { %v61_v24 = vrot.slane %v60_v16, 2  ;;  %vm165_vm3 = vcmask 1044484   ;;  %v67_v26 = vrot.slane %v66_v18, 2  ;;  %v73_v27 = vrot.slane %v72_v19, 2  ;;  %p237_p8 = scmp.ne.s32.totalorder %s199_s20, %s236_s21  ;;  %p242_p10 = scmp.lt.s32.totalorder %s236_s21, %s236_s21 }
  0x1a   :  { %v79_v28 = vrot.slane %v78_v20, 2  ;;  %v90_v29 = vadd.f32 %v89_v21, %v38_v10  ;;  %vm167_vm4 = vcmask 1045509   ;;  %v50_v30 = vadd.f32 %v49_v22, %v48_v14  ;;  %v46_v22 = vld [vmem:[#allocation3 + $0x78] sm:$0xff] }
  0x1b   :  { %v56_v31 = vadd.f32 %v55_v23, %v54_v15  ;;  %v62_v32 = vadd.f32 %v61_v24, %v60_v16  ;;  %v85_v33 = vrot.slane %v84_v25, 2  ;;  %vm169_vm5 = vcmask 1046534   ;;  %p243_p11 = por %p242_p10, %p241_p9 }
  0x1c   :  { %v68_v34 = vadd.f32 %v67_v26, %v66_v18  ;;  %v74_v35 = vadd.f32 %v73_v27, %v72_v19  ;;  %v80_v36 = vadd.f32 %v79_v28, %v78_v20  ;;  %v91_v37 = vrot.slane %v90_v29, 2 }
  0x1d   :  { %vm171_vm6 = vcmask 1047559   ;;  %v51_v38 = vrot.slane %v50_v30, 1  ;;  %v57_v39 = vrot.slane %v56_v31, 1  ;;  %v63_v40 = vrot.slane %v62_v32, 1  ;;  %p244_p12 = pnand %p243_p11, %p237_p8 }
  0x1e   :  { %v86_v41 = vadd.f32 %v85_v33, %v84_v25  ;;  %v69_v42 = vrot.slane %v68_v34, 1  ;;  %v75_v43 = vrot.slane %v74_v35, 1  ;;  %v81_v44 = vrot.slane %v80_v36, 1 }
  0x1f   :  { %v92_v45 = vadd.f32 %v91_v37, %v90_v29  ;;  %v52_v48 = vadd.f32 %v51_v38, %v50_v30  ;;  %v58_v49 = vadd.f32 %v57_v39, %v56_v31  ;;  %v64_v50 = vadd.f32 %v63_v40, %v62_v32 }
  0x20   :  { %v87_v51 = vrot.slane %v86_v41, 1  ;;  %v70_v54 = vadd.f32 %v69_v42, %v68_v34  ;;  %v76_v55 = vadd.f32 %v75_v43, %v74_v35  ;;  %v82_v56 = vadd.f32 %v81_v44, %v80_v36 }
  0x21   :  { %v93_v57 = vrot.slane %v92_v45, 1  ;;  %v160_v60 = vsel %vm159_vm0, %v58_v49, %v52_v48  ;;  %v95_v62 = vrot.slane %v39_v46, 4  ;;  %v101_v63 = vrot.slane %v40_v47, 4 }
  0x22   :  { %v88_v59 = vadd.f32 %v87_v51, %v86_v41  ;;  %v162_v1 = vsel %vm161_vm1, %v64_v50, %v160_v60  ;;  %v107_v2 = vrot.slane %v41_v52, 4  ;;  %v113_v3 = vrot.slane %v42_v53, 4 }
  0x23   :  { %v94_v0 = vadd.f32 %v93_v57, %v92_v45  ;;  %v164_v4 = vsel %vm163_vm2, %v70_v54, %v162_v1  ;;  %v96_v5 = vadd.f32 %v95_v62, %v39_v46  ;;  %v102_v6 = vadd.f32 %v101_v63, %v40_v47 }
  0x24   :  { %v119_v7 = vrot.slane %v43_v58, 4  ;;  %v166_v8 = vsel %vm165_vm3, %v76_v55, %v164_v4  ;;  %v108_v9 = vadd.f32 %v107_v2, %v41_v52  ;;  %v114_v10 = vadd.f32 %v113_v3, %v42_v53 }
  0x25   :  { %v125_v11 = vrot.slane %v44_v61, 4  ;;  %v168_v12 = vsel %vm167_vm4, %v82_v56, %v166_v8  ;;  %v97_v13 = vrot.slane %v96_v5, 2  ;;  %v103_v14 = vrot.slane %v102_v6, 2 }
  0x26   :  { %v120_v15 = vadd.f32 %v119_v7, %v43_v58  ;;  %v170_v16 = vsel %vm169_vm5, %v88_v59, %v168_v12  ;;  %v109_v18 = vrot.slane %v108_v9, 2  ;;  %v115_v19 = vrot.slane %v114_v10, 2 }
  0x27   :  { %v126_v20 = vadd.f32 %v125_v11, %v44_v61  ;;  %v172_v21 = vsel %vm171_vm6, %v94_v0, %v170_v16  ;;  %v98_v23 = vadd.f32 %v97_v13, %v96_v5  ;;  %v104_v24 = vadd.f32 %v103_v14, %v102_v6 }
  0x28   :  { %v121_v25 = vrot.slane %v120_v15, 2  ;;  %v182_v26 = vadd.f32 1.0, %v172_v21  ;;  %v110_v27 = vadd.f32 %v109_v18, %v108_v9  ;;  %v116_v28 = vadd.f32 %v115_v19, %v114_v10 }
  0x29   :  { %v127_v29 = vrot.slane %v126_v20, 2  ;;  %v99_v30 = vrot.slane %v98_v23, 1  ;;  %v105_v31 = vrot.slane %v104_v24, 1  ;;  %v131_v33 = vrot.slane %v45_v17, 4 }
  0x2a   :  { %v122_v32 = vadd.f32 %v121_v25, %v120_v15  ;;  %191 = vst [vmem:[#allocation6] sm:$0xff] %v182_v26  ;;  %v111_v34 = vrot.slane %v110_v27, 1  ;;  %v117_v35 = vrot.slane %v116_v28, 1  ;;  %v137_v37 = vrot.slane %v46_v22, 4 }
  0x2b   :  { %v128_v36 = vadd.f32 %v127_v29, %v126_v20  ;;  %v100_v38 = vadd.f32 %v99_v30, %v98_v23  ;;  %v106_v39 = vadd.f32 %v105_v31, %v104_v24  ;;  %v132_v41 = vadd.f32 %v131_v33, %v45_v17 }
  0x2c   :  { %v123_v40 = vrot.slane %v122_v32, 1  ;;  %v112_v42 = vadd.f32 %v111_v34, %v110_v27  ;;  %v118_v43 = vadd.f32 %v117_v35, %v116_v28  ;;  %v138_v45 = vadd.f32 %v137_v37, %v46_v22 }
  0x2d   :  { %v129_v44 = vrot.slane %v128_v36, 1  ;;  %v133_v47 = vrot.slane %v132_v41, 2  ;;  %v173_v48 = vsel %vm159_vm0, %v106_v39, %v100_v38 }
  0x2e   :  { %v124_v46 = vadd.f32 %v123_v40, %v122_v32  ;;  %v139_v50 = vrot.slane %v138_v45, 2  ;;  %v174_v51 = vsel %vm161_vm1, %v112_v42, %v173_v48 }
  0x2f   :  { %v130_v49 = vadd.f32 %v129_v44, %v128_v36  ;;  %v134_v52 = vadd.f32 %v133_v47, %v132_v41  ;;  %v175_v53 = vsel %vm163_vm2, %v118_v43, %v174_v51 }
  0x30   :  { %v140_v54 = vadd.f32 %v139_v50, %v138_v45  ;;  %v176_v55 = vsel %vm165_vm3, %v124_v46, %v175_v53 }
  0x31   :  { %v135_v56 = vrot.slane %v134_v52, 1  ;;  %v177_v58 = vsel %vm167_vm4, %v130_v49, %v176_v55 }
  0x32   :  { %v141_v57 = vrot.slane %v140_v54, 1 }
  0x33   :  { %v136_v59 = vadd.f32 %v135_v56, %v134_v52 }
  0x34   :  { %v142_v60 = vadd.f32 %v141_v57, %v140_v54 }
  0x35   :  { %v178_v61 = vsel %vm169_vm5, %v136_v59, %v177_v58 }
  0x36   :  { %v179_v62 = vsel %vm171_vm6, %v142_v60, %v178_v61 }
  0x37   :  { %v183_v63 = vadd.f32 1.0, %v179_v62 }
  0x39   :  { %192 = vst [vmem:[#allocation6 + $0x8] sm:$0xff] %v183_v63 }
  0x3a   :  { %247 = shalt.err (!%p244_p12)
}
  0x3b   :  { %s248_s24 = scalar_lea.hbm %s321_s1, 256 }
  0x3c   :  { %p249_p13 = scmp.ne.s32.totalorder %s321_s1, %s248_s24  ;;  %p252_p0 = scmp.lt.u32.totalorder %s248_s24, %s321_s1 }
  0x3e   :  { %p254_p1 = pnand %p252_p0, %p249_p13 }
  0x40   :  { %257 = shalt.err (!%p254_p1)
}
  0x41   :  { %204 = dma.vmem_to_hbm [thread:$0]  %s199_s20, 256, %s321_s1, [#allocation5], %s263_s16, %s263_s16, %s264_s17  }
  0x42   :  { %260 = dma.done.wait [#allocation5], 256  }
  0x43   :  { %261 = vsyncadd [#allocation5], 4294967040 }
  0x44   :  { %208 = vsyncpa [#allocation4], 1 }
  0x45   :  { %209 = vsyncpa [#allocation5], 1 }

</bundles_post_ra>
